<compile_context>
chip_gen: v5e
topology: v5e:2x2
jax: 0.10.0
libtpu: 0.0.40
codegen_flags: <defaults>
</compile_context>

<pallas_src>
import jax
import jax.numpy as jnp
from jax.experimental import pallas as pl
from jax.experimental.pallas import tpu as pltpu


def _make_maxpool_kernel(w, wo, m):
    """Kernel for a (br, P) block with P = 2*w*m lanes (m image row-pairs per row)."""
    p = 2 * w * m
    po = p // 4

    def kernel(x_ref, o_ref):
        x = x_ref[...]                                               # (br, p)

        # 2x2 window max, landing on lanes 2*h*w + 2*o (h = row-pair idx, o = out col).
        v = jnp.maximum(x, pltpu.roll(x, shift=p - 1, axis=1))       # column pairs
        v = jnp.maximum(v, pltpu.roll(v, shift=p - w, axis=1))       # row pairs

        # Lane-compaction barrels.  The bit masks come from a 1-sublane iota row and
        # broadcast across the block (hoisted mask: ~1/8 of the VPU mask math).
        lane = jax.lax.broadcasted_iota(jnp.int32, (1, p), dimension=1)

        # Stage 1: global even-lane compaction, lane j <- lane 2j (displacement = j).
        # Needed destinations are j = h*w + o (o < wo, h < m).
        limit1 = (m - 1) * w + wo
        k = 1
        while k < limit1:
            v = jnp.where((lane & k) != 0, pltpu.roll(v, shift=p - k, axis=1), v)
            k *= 2

        # Stage 2 (only when several row-pairs are packed per kernel row):
        # lane h*wo + o <- lane h*w + o, displacement = j & ~(wo-1) (wo is a power of 2
        # by construction whenever m > 1), i.e. again a pure bits-of-j barrel.
        if m > 1:
            k = wo
            while k < m * wo:
                v = jnp.where((lane & k) != 0, pltpu.roll(v, shift=p - k, axis=1), v)
                k *= 2

        o_ref[...] = v[:, :po].astype(o_ref.dtype)

    return kernel


def _choose_pack_factor(half_rows, wo, w, itemsize, target_block_bytes):
    """How many image row-pairs to pack into one kernel row (lane axis)."""
    if wo >= 128:                      # already lane-dense with one row-pair per row
        return 1
    if wo < 2 or (wo & (wo - 1)) != 0:  # stage-2 barrel needs wo to be a power of two
        return 1
    want = -(-128 // wo)                               # m giving a >=128-lane output row
    max_m = max(1, (target_block_bytes // 2) // (2 * w * itemsize))  # keep one row small
    limit = min(half_rows, max_m)
    for m in range(want, limit + 1):                   # smallest divisor >= want
        if half_rows % m == 0:
            return m
    for m in range(limit, 0, -1):                      # otherwise: largest that fits
        if half_rows % m == 0:
            return m
    return 1


def _choose_block_rows(rows, row_bytes, target_block_bytes, sublane):
    """Sublane-aligned divisor of `rows` whose block stays near the byte target."""
    cap = max(1, target_block_bytes // max(1, row_bytes))
    if rows >= 4 * sublane:
        cap = min(cap, rows // 2)      # keep >= 2 parallel grid steps (v7x megacore)
    cap = min(cap, rows)
    start = cap - cap % sublane
    for d in range(start, 0, -sublane):
        if rows % d == 0:
            return d
    return rows                         # block == full extent is always a legal tiling


def maxpool2d_2x2(x, *, target_block_bytes=4 << 20):
    """nn.MaxPool2d(kernel_size=2, stride=2) on an NCHW tensor via Pallas."""
    N, C, H, W = x.shape
    assert H % 2 == 0 and W % 2 == 0, "2x2 / stride-2 pooling needs even H and W"
    Ho, Wo = H // 2, W // 2
    NC = N * C
    itemsize = jnp.dtype(x.dtype).itemsize
    sublane = 8 * max(1, 4 // itemsize)             # 8 (f32) / 16 (bf16) / 32 (int8)

    # ---- pick the packed-row geometry -------------------------------------------
    m = _choose_pack_factor(NC * H // 2, Wo, W, itemsize, target_block_bytes)
    P = 2 * W * m                                   # lanes per kernel row (input)
    Po = P // 4                                     # lanes per kernel row (output)
    R = (NC * H * W) // P                           # kernel rows

    xr = x.reshape(R, P)                            # free, row-major reshape

    br = _choose_block_rows(R, P * itemsize, target_block_bytes, sublane)
    grid = (R // br,)

    # ---- VMEM budget: 2x double-buffered blocks + elementwise-chain temporaries --
    in_block_bytes = br * P * itemsize
    out_block_bytes = br * Po * itemsize
    vmem_limit = 2 * (in_block_bytes + out_block_bytes) + 6 * in_block_bytes + (4 << 20)
    vmem_limit = int(min(max(vmem_limit, 16 << 20), 48 << 20))   # safe on v7x (64 MiB)

    out2d = pl.pallas_call(
        _make_maxpool_kernel(W, Wo, m),
        out_shape=jax.ShapeDtypeStruct((R, Po), x.dtype),
        grid=grid,
        in_specs=[pl.BlockSpec((br, P), lambda i: (i, 0))],
        out_specs=pl.BlockSpec((br, Po), lambda i: (i, 0)),
        compiler_params=pltpu.CompilerParams(
            dimension_semantics=("parallel",),
            vmem_limit_bytes=vmem_limit,
        ),
        cost_estimate=pl.CostEstimate(
            flops=3 * NC * Ho * Wo,                 # 3 max ops per output element
            transcendentals=0,
            bytes_accessed=int((NC * H * W + NC * Ho * Wo) * itemsize),
        ),
    )(xr)

    return out2d.reshape(N, C, Ho, Wo)


if __name__ == "__main__":
    key = jax.random.PRNGKey(0)
    # Small shape consistent with the module: NCHW = (2, 4, 16, 16)
    x = jax.random.normal(key, (2, 4, 16, 16), dtype=jnp.float32)

    y = maxpool2d_2x2(x)
    jax.block_until_ready(y)

    # Pure-JAX reference (same semantics as nn.MaxPool2d(2, 2)).
    ref = x.reshape(2, 4, 8, 2, 8, 2).max(axis=(3, 5))
    assert y.shape == (2, 4, 8, 8), y.shape
    assert y.dtype == x.dtype, y.dtype
    assert jnp.allclose(y, ref), "Pallas maxpool mismatch vs reference"

    print("KERNEL_OK")
</pallas_src>

<mosaic_0001>
module attributes {stable_mosaic.version = 11 : i64} {
  func.func @kernel(%arg0: i32, %arg1: memref<4x512xf32, #tpu.memory_space<vmem>>, %arg2: memref<4x128xf32, #tpu.memory_space<vmem>>) attributes {dimension_semantics = [#tpu.dimension_semantics<parallel>], iteration_bounds = array<i64: 1>, scalar_prefetch = 0 : i64, scratch_operands = 0 : i64, tpu.core_type = #tpu.core_type<tc>, window_params = [{transform_indices = @transform_0, window_bounds = array<i64: 4, 512>}, {transform_indices = @transform_1, window_bounds = array<i64: 4, 128>}]} {
    %c0 = arith.constant 0 : index
    %c0_0 = arith.constant 0 : index
    %0 = vector.load %arg1[%c0, %c0_0] : memref<4x512xf32, #tpu.memory_space<vmem>>, vector<4x512xf32>
    %c511_i32 = arith.constant 511 : i32
    %1 = tpu.dynamic_rotate %0 by %c511_i32 dim 1 : vector<4x512xf32>, i32 -> vector<4x512xf32>
    %2 = arith.maximumf %0, %1 : vector<4x512xf32>
    %c496_i32 = arith.constant 496 : i32
    %3 = tpu.dynamic_rotate %2 by %c496_i32 dim 1 : vector<4x512xf32>, i32 -> vector<4x512xf32>
    %4 = arith.maximumf %2, %3 : vector<4x512xf32>
    %5 = tpu.iota {dimensions = array<i32: 1>} : vector<1x512xi32>
    %c1_i32 = arith.constant 1 : i32
    %6 = vector.broadcast %c1_i32 : i32 to vector<1x512xi32>
    %7 = arith.andi %5, %6 : vector<1x512xi32>
    %c0_i32 = arith.constant 0 : i32
    %8 = vector.broadcast %c0_i32 : i32 to vector<1x512xi32>
    %9 = arith.cmpi ne, %7, %8 : vector<1x512xi32>
    %c511_i32_1 = arith.constant 511 : i32
    %10 = tpu.dynamic_rotate %4 by %c511_i32_1 dim 1 : vector<4x512xf32>, i32 -> vector<4x512xf32>
    %11 = vector.shape_cast %9 : vector<1x512xi1> to vector<1x512xi1>
    %12 = vector.broadcast %11 : vector<1x512xi1> to vector<4x512xi1>
    %13 = arith.select %12, %10, %4 : vector<4x512xi1>, vector<4x512xf32>
    %c2_i32 = arith.constant 2 : i32
    %14 = vector.broadcast %c2_i32 : i32 to vector<1x512xi32>
    %15 = arith.andi %5, %14 : vector<1x512xi32>
    %c0_i32_2 = arith.constant 0 : i32
    %16 = vector.broadcast %c0_i32_2 : i32 to vector<1x512xi32>
    %17 = arith.cmpi ne, %15, %16 : vector<1x512xi32>
    %c510_i32 = arith.constant 510 : i32
    %18 = tpu.dynamic_rotate %13 by %c510_i32 dim 1 : vector<4x512xf32>, i32 -> vector<4x512xf32>
    %19 = vector.shape_cast %17 : vector<1x512xi1> to vector<1x512xi1>
    %20 = vector.broadcast %19 : vector<1x512xi1> to vector<4x512xi1>
    %21 = arith.select %20, %18, %13 : vector<4x512xi1>, vector<4x512xf32>
    %c4_i32 = arith.constant 4 : i32
    %22 = vector.broadcast %c4_i32 : i32 to vector<1x512xi32>
    %23 = arith.andi %5, %22 : vector<1x512xi32>
    %c0_i32_3 = arith.constant 0 : i32
    %24 = vector.broadcast %c0_i32_3 : i32 to vector<1x512xi32>
    %25 = arith.cmpi ne, %23, %24 : vector<1x512xi32>
    %c508_i32 = arith.constant 508 : i32
    %26 = tpu.dynamic_rotate %21 by %c508_i32 dim 1 : vector<4x512xf32>, i32 -> vector<4x512xf32>
    %27 = vector.shape_cast %25 : vector<1x512xi1> to vector<1x512xi1>
    %28 = vector.broadcast %27 : vector<1x512xi1> to vector<4x512xi1>
    %29 = arith.select %28, %26, %21 : vector<4x512xi1>, vector<4x512xf32>
    %c8_i32 = arith.constant 8 : i32
    %30 = vector.broadcast %c8_i32 : i32 to vector<1x512xi32>
    %31 = arith.andi %5, %30 : vector<1x512xi32>
    %c0_i32_4 = arith.constant 0 : i32
    %32 = vector.broadcast %c0_i32_4 : i32 to vector<1x512xi32>
    %33 = arith.cmpi ne, %31, %32 : vector<1x512xi32>
    %c504_i32 = arith.constant 504 : i32
    %34 = tpu.dynamic_rotate %29 by %c504_i32 dim 1 : vector<4x512xf32>, i32 -> vector<4x512xf32>
    %35 = vector.shape_cast %33 : vector<1x512xi1> to vector<1x512xi1>
    %36 = vector.broadcast %35 : vector<1x512xi1> to vector<4x512xi1>
    %37 = arith.select %36, %34, %29 : vector<4x512xi1>, vector<4x512xf32>
    %c16_i32 = arith.constant 16 : i32
    %38 = vector.broadcast %c16_i32 : i32 to vector<1x512xi32>
    %39 = arith.andi %5, %38 : vector<1x512xi32>
    %c0_i32_5 = arith.constant 0 : i32
    %40 = vector.broadcast %c0_i32_5 : i32 to vector<1x512xi32>
    %41 = arith.cmpi ne, %39, %40 : vector<1x512xi32>
    %c496_i32_6 = arith.constant 496 : i32
    %42 = tpu.dynamic_rotate %37 by %c496_i32_6 dim 1 : vector<4x512xf32>, i32 -> vector<4x512xf32>
    %43 = vector.shape_cast %41 : vector<1x512xi1> to vector<1x512xi1>
    %44 = vector.broadcast %43 : vector<1x512xi1> to vector<4x512xi1>
    %45 = arith.select %44, %42, %37 : vector<4x512xi1>, vector<4x512xf32>
    %c32_i32 = arith.constant 32 : i32
    %46 = vector.broadcast %c32_i32 : i32 to vector<1x512xi32>
    %47 = arith.andi %5, %46 : vector<1x512xi32>
    %c0_i32_7 = arith.constant 0 : i32
    %48 = vector.broadcast %c0_i32_7 : i32 to vector<1x512xi32>
    %49 = arith.cmpi ne, %47, %48 : vector<1x512xi32>
    %c480_i32 = arith.constant 480 : i32
    %50 = tpu.dynamic_rotate %45 by %c480_i32 dim 1 : vector<4x512xf32>, i32 -> vector<4x512xf32>
    %51 = vector.shape_cast %49 : vector<1x512xi1> to vector<1x512xi1>
    %52 = vector.broadcast %51 : vector<1x512xi1> to vector<4x512xi1>
    %53 = arith.select %52, %50, %45 : vector<4x512xi1>, vector<4x512xf32>
    %c64_i32 = arith.constant 64 : i32
    %54 = vector.broadcast %c64_i32 : i32 to vector<1x512xi32>
    %55 = arith.andi %5, %54 : vector<1x512xi32>
    %c0_i32_8 = arith.constant 0 : i32
    %56 = vector.broadcast %c0_i32_8 : i32 to vector<1x512xi32>
    %57 = arith.cmpi ne, %55, %56 : vector<1x512xi32>
    %c448_i32 = arith.constant 448 : i32
    %58 = tpu.dynamic_rotate %53 by %c448_i32 dim 1 : vector<4x512xf32>, i32 -> vector<4x512xf32>
    %59 = vector.shape_cast %57 : vector<1x512xi1> to vector<1x512xi1>
    %60 = vector.broadcast %59 : vector<1x512xi1> to vector<4x512xi1>
    %61 = arith.select %60, %58, %53 : vector<4x512xi1>, vector<4x512xf32>
    %c128_i32 = arith.constant 128 : i32
    %62 = vector.broadcast %c128_i32 : i32 to vector<1x512xi32>
    %63 = arith.andi %5, %62 : vector<1x512xi32>
    %c0_i32_9 = arith.constant 0 : i32
    %64 = vector.broadcast %c0_i32_9 : i32 to vector<1x512xi32>
    %65 = arith.cmpi ne, %63, %64 : vector<1x512xi32>
    %c384_i32 = arith.constant 384 : i32
    %66 = tpu.dynamic_rotate %61 by %c384_i32 dim 1 : vector<4x512xf32>, i32 -> vector<4x512xf32>
    %67 = vector.shape_cast %65 : vector<1x512xi1> to vector<1x512xi1>
    %68 = vector.broadcast %67 : vector<1x512xi1> to vector<4x512xi1>
    %69 = arith.select %68, %66, %61 : vector<4x512xi1>, vector<4x512xf32>
    %c8_i32_10 = arith.constant 8 : i32
    %70 = vector.broadcast %c8_i32_10 : i32 to vector<1x512xi32>
    %71 = arith.andi %5, %70 : vector<1x512xi32>
    %c0_i32_11 = arith.constant 0 : i32
    %72 = vector.broadcast %c0_i32_11 : i32 to vector<1x512xi32>
    %73 = arith.cmpi ne, %71, %72 : vector<1x512xi32>
    %c504_i32_12 = arith.constant 504 : i32
    %74 = tpu.dynamic_rotate %69 by %c504_i32_12 dim 1 : vector<4x512xf32>, i32 -> vector<4x512xf32>
    %75 = vector.shape_cast %73 : vector<1x512xi1> to vector<1x512xi1>
    %76 = vector.broadcast %75 : vector<1x512xi1> to vector<4x512xi1>
    %77 = arith.select %76, %74, %69 : vector<4x512xi1>, vector<4x512xf32>
    %c16_i32_13 = arith.constant 16 : i32
    %78 = vector.broadcast %c16_i32_13 : i32 to vector<1x512xi32>
    %79 = arith.andi %5, %78 : vector<1x512xi32>
    %c0_i32_14 = arith.constant 0 : i32
    %80 = vector.broadcast %c0_i32_14 : i32 to vector<1x512xi32>
    %81 = arith.cmpi ne, %79, %80 : vector<1x512xi32>
    %c496_i32_15 = arith.constant 496 : i32
    %82 = tpu.dynamic_rotate %77 by %c496_i32_15 dim 1 : vector<4x512xf32>, i32 -> vector<4x512xf32>
    %83 = vector.shape_cast %81 : vector<1x512xi1> to vector<1x512xi1>
    %84 = vector.broadcast %83 : vector<1x512xi1> to vector<4x512xi1>
    %85 = arith.select %84, %82, %77 : vector<4x512xi1>, vector<4x512xf32>
    %c32_i32_16 = arith.constant 32 : i32
    %86 = vector.broadcast %c32_i32_16 : i32 to vector<1x512xi32>
    %87 = arith.andi %5, %86 : vector<1x512xi32>
    %c0_i32_17 = arith.constant 0 : i32
    %88 = vector.broadcast %c0_i32_17 : i32 to vector<1x512xi32>
    %89 = arith.cmpi ne, %87, %88 : vector<1x512xi32>
    %c480_i32_18 = arith.constant 480 : i32
    %90 = tpu.dynamic_rotate %85 by %c480_i32_18 dim 1 : vector<4x512xf32>, i32 -> vector<4x512xf32>
    %91 = vector.shape_cast %89 : vector<1x512xi1> to vector<1x512xi1>
    %92 = vector.broadcast %91 : vector<1x512xi1> to vector<4x512xi1>
    %93 = arith.select %92, %90, %85 : vector<4x512xi1>, vector<4x512xf32>
    %c64_i32_19 = arith.constant 64 : i32
    %94 = vector.broadcast %c64_i32_19 : i32 to vector<1x512xi32>
    %95 = arith.andi %5, %94 : vector<1x512xi32>
    %c0_i32_20 = arith.constant 0 : i32
    %96 = vector.broadcast %c0_i32_20 : i32 to vector<1x512xi32>
    %97 = arith.cmpi ne, %95, %96 : vector<1x512xi32>
    %c448_i32_21 = arith.constant 448 : i32
    %98 = tpu.dynamic_rotate %93 by %c448_i32_21 dim 1 : vector<4x512xf32>, i32 -> vector<4x512xf32>
    %99 = vector.shape_cast %97 : vector<1x512xi1> to vector<1x512xi1>
    %100 = vector.broadcast %99 : vector<1x512xi1> to vector<4x512xi1>
    %101 = arith.select %100, %98, %93 : vector<4x512xi1>, vector<4x512xf32>
    %102 = vector.extract_strided_slice %101 {offsets = [0, 0], sizes = [4, 128], strides = [1, 1]} : vector<4x512xf32> to vector<4x128xf32>
    %c0_22 = arith.constant 0 : index
    %c0_23 = arith.constant 0 : index
    %103 = vector.load %arg2[%c0_22, %c0_23] : memref<4x128xf32, #tpu.memory_space<vmem>>, vector<4x128xf32>
    tpu.vector_store %arg2[%c0_22, %c0_23], %102 {strides = array<i32>} : memref<4x128xf32, #tpu.memory_space<vmem>>, vector<4x128xf32>,
    return
  }
  func.func @transform_0(%arg0: i32) -> (i32, i32) {
    %c0_i32 = arith.constant 0 : i32
    %c0_i32_0 = arith.constant 0 : i32
    return %arg0, %c0_i32 : i32, i32
  }
  func.func @transform_1(%arg0: i32) -> (i32, i32) {
    %c0_i32 = arith.constant 0 : i32
    %c0_i32_0 = arith.constant 0 : i32
    return %arg0, %c0_i32 : i32, i32
  }
}

</mosaic_0001>

<bundles_post_ra>
// kernel: tpu_custom_call.1
= control target key start
LH: loop header
LB: loop body
LE: loop exit
PB: predicated region body
PF: predicated region fallthrough
CT: control target
= control target key end

     0   :  { %6 = vsyncpa [#allocation3], 0  ;;  %s787_s0 = inlined_call_operand.hbm [shape: f32[4,512], index: 0, kind: input, shape index: {}]   ;;  %s788_s1 = inlined_call_operand.hbm [shape: f32[4,128], index: 1, kind: output, shape index: {}]  }
   0x1   :  { %7 = vsyncpa [#allocation4], 0  ;;  %s13_s8 = sshll.u32 %s787_s0, 4  ;;  %s505_s9 = smov [#allocation2]   ;;  %s14_s8 = int_to_ptr.hbm [resolvable:$true] %s13_s8 }
   0x2   :  { %s15_s10 = sshll.u32 %s505_s9, 4  ;;  %s16_s10 = int_to_ptr.vmem [resolvable:$true] %s15_s10 }
   0x3   :  { %18 = dma.hbm_to_vmem [thread:$0]  %s14_s8, 256, %s16_s10, [#allocation3]  }
   0x4   :  { %501 = dma.done.wait [#allocation3], 256  }
   0x5   :  { %502 = vsyncadd [#allocation3], 4294967040  ;;  %v24_v0 = vld [vmem:[#allocation2 + $0x8] sm:$0xff]  ;;  %v23_v1 = vld [vmem:[#allocation2] sm:$0xff]  ;;  %s506_s11 = smov 127   ;;  %v46_v6 = vlaneseq  ;;  %vm59_vm1 = vcmask 1043456  }
   0x6   :  { %29 = vst [vmem:[#allocation1 + $0x10] ss:$2 sm:$0xff] %v24_v0  ;;  %s507_s0 = smov 112   ;;  %s508_s12 = smov 126  }
   0x7   :  { %27 = vst [vmem:[#allocation1] ss:$2 sm:$0xff] %v23_v1  ;;  %v531_v9 = vand.u32 127, %v46_v6  ;;  %s509_s13 = smov 124   ;;  %s510_s14 = smov 120  }
   0x8   :  { %s511_s15 = smov 96   ;;  %s512_s16 = smov 64  }
   0x9   :  { %vm48_vm0 = vcmp.lt.s32.totalorder %v531_v9, 127  ;;  %vm87_vm2 = vcmp.lt.s32.totalorder %v531_v9, 112  ;;  %v564_v45 = vadd.s32 128, %v531_v9  ;;  %v567_v46 = vadd.s32 256, %v531_v9  ;;  %s513_s17 = smov [#allocation5]   ;;  %s434_s21 = sshll.u32 %s788_s1, 4  ;;  %s435_s21 = int_to_ptr.hbm [resolvable:$true] %s434_s21 }
   0xa   :  { %v107_v47 = vand.u32 1, %v531_v9  ;;  %v573_v50 = vadd.s32 384, %v531_v9  ;;  %vm179_vm7 = vcmp.lt.s32.totalorder %v531_v9, 126  ;;  %vm212_vm12 = vcmp.lt.s32.totalorder %v531_v9, 124  ;;  %s432_s18 = sshll.u32 %s513_s17, 4  ;;  %s433_s18 = int_to_ptr.vmem [resolvable:$true] %s432_s18 }
   0xb   :  { %v108_v48 = vand.u32 1, %v564_v45  ;;  %v109_v49 = vand.u32 1, %v567_v46 }
   0xc   :  { %vm111_vm3 = vcmp.ne.s32.totalorder %v107_v47, 0  ;;  %v110_v63 = vand.u32 1, %v573_v50 }
   0xd   :  { %v32_v2 = vld.sshfl [vmem:[#allocation1 + $0x10] sm:$0xff pattern:$0x75316420]  ;;  %v33_v4 = vld.sshfl [vmem:[#allocation1 + $0x18] sm:$0xff pattern:$0x75316420] }
   0xe   :  { %42 = vrot.lane.b32.xlu1 %v32_v2, %s506_s11  ;;  %v30_v3 = vld.sshfl [vmem:[#allocation1] sm:$0xff pattern:$0x75316420]  ;;  %v31_v5 = vld.sshfl [vmem:[#allocation1 + $0x8] sm:$0xff pattern:$0x75316420] }
   0xf   :  { %38 = vrot.lane.b32.xlu0 %v30_v3, %s506_s11  ;;  %vm112_vm4 = vcmp.ne.s32.totalorder %v108_v48, 0  ;;  %vm113_vm5 = vcmp.ne.s32.totalorder %v109_v49, 0  ;;  %vm114_vm6 = vcmp.ne.s32.totalorder %v110_v63, 0  ;;  %v163_v3 = vand.u32 2, %v531_v9 }
  0x11   :  { %vm167_vm8 = vcmp.ne.s32.totalorder %v163_v3, 0 }
  0x16   :  { %44 = vrot.lane.b32.xlu1 %v33_v4, %s506_s11  ;;  %v164_v4 = vand.u32 2, %v564_v45 }
  0x17   :  { %40 = vrot.lane.b32.xlu0 %v31_v5, %s506_s11 }
  0x18   :  { %vm168_vm9 = vcmp.ne.s32.totalorder %v164_v4, 0 }
  0x80   :  { %v43_v7 = vpop.permute.xlu1 %42 }
  0x81   :  { %v39_v8 = vpop.permute.xlu0 %38 }
  0x88   :  { %v45_v10 = vpop.permute.xlu1 %44 }
  0x89   :  { %v52_v11 = vsel %vm48_vm0, %v45_v10, %v39_v8  ;;  %v41_v12 = vpop.permute.xlu0 %40  ;;  %v49_v15 = vsel %vm48_vm0, %v43_v7, %v45_v10 }
  0x8a   :  { %v58_v13 = vrot.slane %v52_v11, 4  ;;  %v50_v14 = vsel %vm48_vm0, %v41_v12, %v43_v7  ;;  %v51_v18 = vsel %vm48_vm0, %v39_v8, %v41_v12 }
  0x8b   :  { %v57_v16 = vrot.slane %v50_v14, 4  ;;  %v165_v14 = vand.u32 2, %v567_v46 }
  0x8c   :  { %v61_v17 = vsel %vm59_vm1, %v49_v15, %v58_v13  ;;  %v166_v13 = vand.u32 2, %v573_v50 }
  0x8d   :  { %v65_v19 = vmax.f32 %v24_v0, %v61_v17  ;;  %v60_v20 = vsel %vm59_vm1, %v51_v18, %v57_v16  ;;  %vm169_vm11 = vcmp.ne.s32.totalorder %v165_v14, 0 }
  0x8e   :  { %v64_v21 = vmax.f32 %v23_v1, %v60_v20  ;;  %vm170_vm10 = vcmp.ne.s32.totalorder %v166_v13, 0  ;;  %v196_v20 = vand.u32 4, %v531_v9 }
  0x8f   :  { %70 = vst [vmem:[#allocation1 + $0x10] ss:$2 sm:$0xff] %v65_v19 }
  0x90   :  { %68 = vst [vmem:[#allocation1] ss:$2 sm:$0xff] %v64_v21  ;;  %vm200_vm13 = vcmp.ne.s32.totalorder %v196_v20, 0 }
  0x96   :  { %v74_v22 = vld.sshfl [vmem:[#allocation1 + $0x18] sm:$0xff pattern:$0x75316420]  ;;  %v73_v23 = vld.sshfl [vmem:[#allocation1 + $0x10] sm:$0xff pattern:$0x75316420] }
  0x97   :  { %85 = vrot.lane.b32.xlu1 %v74_v22, %s507_s0  ;;  %83 = vrot.lane.b32.xlu0 %v73_v23, %s507_s0  ;;  %v71_v24 = vld.sshfl [vmem:[#allocation1] sm:$0xff pattern:$0x75316420]  ;;  %v72_v25 = vld.sshfl [vmem:[#allocation1 + $0x8] sm:$0xff pattern:$0x75316420] }
  0x98   :  { %79 = vrot.lane.b32.xlu2 %v71_v24, %s507_s0 }
  0xa0   :  { %81 = vrot.lane.b32.xlu2 %v72_v25, %s507_s0  ;;  %v197_v25 = vand.u32 4, %v564_v45 }
  0xa2   :  { %vm201_vm14 = vcmp.ne.s32.totalorder %v197_v25, 0 }
  0xf2   :  { %v80_v26 = vpop.permute.xlu2 %79 }
  0xfa   :  { %v82_v27 = vpop.permute.xlu2 %81 }
  0xfb   :  { %v90_v34 = vsel %vm87_vm2, %v80_v26, %v82_v27 }
 0x109   :  { %v86_v28 = vpop.permute.xlu1 %85  ;;  %v84_v29 = vpop.permute.xlu0 %83 }
 0x10a   :  { %v91_v30 = vsel %vm87_vm2, %v86_v28, %v80_v26  ;;  %v89_v31 = vsel %vm87_vm2, %v82_v27, %v84_v29  ;;  %v88_v35 = vsel %vm87_vm2, %v84_v29, %v86_v28  ;;  %v199_v26 = vand.u32 4, %v573_v50 }
 0x10b   :  { %v97_v32 = vrot.slane %v91_v30, 4  ;;  %v96_v33 = vrot.slane %v89_v31, 4  ;;  %v198_v27 = vand.u32 4, %v567_v46 }
 0x10c   :  { %vm203_vm15 = vcmp.ne.s32.totalorder %v199_v26, 0 }
 0x10d   :  { %v98_v36 = vsel %vm59_vm1, %v90_v34, %v96_v33  ;;  %v99_v37 = vsel %vm59_vm1, %v88_v35, %v97_v32 }
 0x10e   :  { %v102_v38 = vmax.f32 %v64_v21, %v98_v36  ;;  %v103_v39 = vmax.f32 %v65_v19, %v99_v37  ;;  %v229_v37 = vand.u32 8, %v531_v9 }
 0x110   :  { %117 = vst [vmem:[#allocation1] ss:$2 sm:$0xff] %v102_v38  ;;  %vm617_vm1 = vcmp.ne.s32.totalorder %v229_v37, 0 }
 0x111   :  { %119 = vst [vmem:[#allocation1 + $0x10] ss:$2 sm:$0xff] %v103_v39 }
 0x117   :  { %v121_v40 = vld.sshfl [vmem:[#allocation1 + $0x8] sm:$0xff pattern:$0x75316420]  ;;  %v120_v41 = vld.sshfl [vmem:[#allocation1] sm:$0xff pattern:$0x75316420] }
 0x118   :  { %130 = vrot.lane.b32.xlu0 %v121_v40, %s506_s11  ;;  %128 = vrot.lane.b32.xlu2 %v120_v41, %s506_s11  ;;  %148 = vst [vmem:[#allocation1] ss:$2 sm:$0xff] %v102_v38  ;;  %v122_v42 = vld.sshfl [vmem:[#allocation1 + $0x10] sm:$0xff pattern:$0x75316420]  ;;  %v230_v38 = vand.u32 8, %v564_v45 }
 0x119   :  { %132 = vrot.lane.b32.xlu1 %v122_v42, %s506_s11  ;;  %v123_v43 = vld.sshfl [vmem:[#allocation1 + $0x18] sm:$0xff pattern:$0x75316420] }
 0x11a   :  { %150 = vst [vmem:[#allocation1 + $0x10] ss:$2 sm:$0xff] %v103_v39  ;;  %v231_v39 = vand.u32 8, %v567_v46 }
 0x11f   :  { %v151_v55 = vld.sshfl [vmem:[#allocation1] sm:$0xff pattern:$0x75316420]  ;;  %v152_v59 = vld.sshfl [vmem:[#allocation1 + $0x8] sm:$0xff pattern:$0x75316420] }
 0x120   :  { %134 = vrot.lane.b32.xlu2 %v123_v43, %s506_s11 }
 0x121   :  { %v153_v60 = vld.sshfl [vmem:[#allocation1 + $0x10] sm:$0xff pattern:$0x75316420]  ;;  %v154_v1 = vld.sshfl [vmem:[#allocation1 + $0x18] sm:$0xff pattern:$0x75316420] }
 0x172   :  { %v129_v44 = vpop.permute.xlu2 %128 }
 0x17a   :  { %v135_v52 = vpop.permute.xlu2 %134 }
 0x17b   :  { %v139_v0 = vsel %vm48_vm0, %v135_v52, %v129_v44 }
 0x17c   :  { %v162_v2 = vsel %vm114_vm6, %v139_v0, %v154_v1 }
 0x18a   :  { %v131_v51 = vpop.permute.xlu0 %130 }
 0x18b   :  { %v138_v53 = vsel %vm48_vm0, %v129_v44, %v131_v51  ;;  %v133_v54 = vpop.permute.xlu1 %132 }
 0x18c   :  { %v136_v56 = vsel %vm48_vm0, %v133_v54, %v135_v52  ;;  %v137_v57 = vsel %vm48_vm0, %v131_v51, %v133_v54  ;;  %v159_v58 = vsel %vm111_vm3, %v138_v53, %v151_v55  ;;  %vm202_vm0 = vcmp.ne.s32.totalorder %v198_v27, 0 }
 0x18d   :  { %171 = vrot.lane.b32.xlu0 %v159_v58, %s508_s12  ;;  %v160_v61 = vsel %vm112_vm4, %v137_v57, %v152_v59  ;;  %v161_v62 = vsel %vm113_vm5, %v136_v56, %v153_v60  ;;  %vm245_vm3 = vcmp.lt.s32.totalorder %v531_v9, 120  ;;  %vm622_vm4 = vcmp.ne.s32.totalorder %v230_v38, 0 }
 0x18e   :  { %173 = vrot.lane.b32.xlu1 %v160_v61, %s508_s12  ;;  %175 = vrot.lane.b32.xlu2 %v161_v62, %s508_s12  ;;  %vm626_vm5 = vcmp.ne.s32.totalorder %v231_v39, 0  ;;  %v232_v55 = vand.u32 8, %v573_v50  ;;  %v262_v59 = vand.u32 16, %v531_v9  ;;  %v263_v60 = vand.u32 16, %v564_v45 }
 0x190   :  { %vm648_vm6 = vcmp.ne.s32.totalorder %v232_v55, 0 }
 0x195   :  { %177 = vrot.lane.b32.xlu0 %v162_v2, %s508_s12 }
 0x1e8   :  { %v176_v6 = vpop.permute.xlu2 %175 }
 0x1ff   :  { %v172_v5 = vpop.permute.xlu0 %171 }
 0x200   :  { %v174_v7 = vpop.permute.xlu1 %173 }
 0x201   :  { %v181_v8 = vsel %vm179_vm7, %v174_v7, %v176_v6  ;;  %v182_v10 = vsel %vm179_vm7, %v172_v5, %v174_v7  ;;  %v264_v7 = vand.u32 16, %v567_v46 }
 0x202   :  { %v192_v11 = vsel %vm167_vm8, %v182_v10, %v159_v58  ;;  %v193_v12 = vsel %vm168_vm9, %v181_v8, %v160_v61  ;;  %vm661_vm8 = vcmp.ne.s32.totalorder %v263_v60, 0 }
 0x203   :  { %204 = vrot.lane.b32.xlu1 %v192_v11, %s509_s13  ;;  %206 = vrot.lane.b32.xlu2 %v193_v12, %s509_s13 }
 0x207   :  { %v178_v15 = vpop.permute.xlu0 %177 }
 0x208   :  { %v180_v16 = vsel %vm179_vm7, %v176_v6, %v178_v15  ;;  %v183_v17 = vsel %vm179_vm7, %v178_v15, %v172_v5  ;;  %vm657_vm7 = vcmp.ne.s32.totalorder %v262_v59, 0  ;;  %v265_v6 = vand.u32 16, %v573_v50 }
 0x209   :  { %v195_v18 = vsel %vm170_vm10, %v183_v17, %v162_v2  ;;  %v194_v19 = vsel %vm169_vm11, %v180_v16, %v161_v62  ;;  %vm677_vm10 = vcmp.ne.s32.totalorder %v264_v7, 0  ;;  %v294_v15 = vand.u32 32, %v531_v9 }
 0x20a   :  { %208 = vrot.lane.b32.xlu0 %v194_v19, %s509_s13  ;;  %vm269_vm9 = vcmp.ne.s32.totalorder %v265_v6, 0  ;;  %vm310_vm11 = vcmp.lt.s32.totalorder %v531_v9, 96 }
 0x20b   :  { %210 = vrot.lane.b32.xlu1 %v195_v18, %s509_s13 }
 0x25d   :  { %v207_v21 = vpop.permute.xlu2 %206 }
 0x275   :  { %v205_v22 = vpop.permute.xlu1 %204 }
 0x276   :  { %v215_v23 = vsel %vm212_vm12, %v205_v22, %v207_v21 }
 0x277   :  { %v225_v24 = vsel %vm200_vm13, %v215_v23, %v192_v11  ;;  %v296_v23 = vand.u32 32, %v567_v46 }
 0x278   :  { %237 = vrot.lane.b32.xlu2 %v225_v24, %s510_s14 }
 0x27c   :  { %v209_v28 = vpop.permute.xlu0 %208 }
 0x27d   :  { %v211_v29 = vpop.permute.xlu1 %210  ;;  %v214_v30 = vsel %vm212_vm12, %v207_v21, %v209_v28  ;;  %v295_v21 = vand.u32 32, %v564_v45 }
 0x27e   :  { %v216_v31 = vsel %vm212_vm12, %v211_v29, %v205_v22  ;;  %v213_v32 = vsel %vm212_vm12, %v209_v28, %v211_v29  ;;  %v226_v33 = vsel %vm201_vm14, %v214_v30, %v193_v12  ;;  %vm691_vm12 = vcmp.ne.s32.totalorder %v294_v15, 0 }
 0x27f   :  { %v228_v34 = vsel %vm203_vm15, %v216_v31, %v195_v18  ;;  %239 = vrot.lane.b32.xlu0 %v226_v33, %s510_s14  ;;  %v227_v35 = vsel %vm202_vm0, %v213_v32, %v194_v19  ;;  %v297_v22 = vand.u32 32, %v573_v50  ;;  %vm703_vm13 = vcmp.ne.s32.totalorder %v295_v21, 0 }
 0x280   :  { %243 = vrot.lane.b32.xlu2 %v228_v34, %s510_s14  ;;  %241 = vrot.lane.b32.xlu1 %v227_v35, %s510_s14  ;;  %vm300_vm15 = vcmp.ne.s32.totalorder %v296_v23, 0  ;;  %v327_v32 = vand.u32 64, %v531_v9  ;;  %vm343_vm0 = vcmp.lt.s32.totalorder %v531_v9, 64 }
 0x281   :  { %vm301_vm14 = vcmp.ne.s32.totalorder %v297_v22, 0 }
 0x2d2   :  { %v238_v36 = vpop.permute.xlu2 %237 }
 0x2da   :  { %v244_v44 = vpop.permute.xlu2 %243 }
 0x2db   :  { %v249_v56 = vsel %vm245_vm3, %v244_v44, %v238_v36 }
 0x2dc   :  { %v261_v58 = vsel %vm648_vm6, %v249_v56, %v228_v34 }
 0x2f1   :  { %v240_v41 = vpop.permute.xlu0 %239 }
 0x2f2   :  { %v248_v47 = vsel %vm245_vm3, %v238_v36, %v240_v41  ;;  %v242_v48 = vpop.permute.xlu1 %241 }
 0x2f3   :  { %v246_v49 = vsel %vm245_vm3, %v242_v48, %v244_v44  ;;  %v247_v51 = vsel %vm245_vm3, %v240_v41, %v242_v48  ;;  %v258_v52 = vsel %vm617_vm1, %v248_v47, %v225_v24 }
 0x2f4   :  { %270 = vrot.lane.b32.xlu0 %v258_v52, %s507_s0  ;;  %v259_v53 = vsel %vm622_vm4, %v247_v51, %v226_v33  ;;  %v260_v54 = vsel %vm626_vm5, %v246_v49, %v227_v35  ;;  %v329_v33 = vand.u32 64, %v567_v46 }
 0x2f5   :  { %272 = vrot.lane.b32.xlu1 %v259_v53, %s507_s0  ;;  %274 = vrot.lane.b32.xlu2 %v260_v54, %s507_s0 }
 0x2fc   :  { %276 = vrot.lane.b32.xlu0 %v261_v58, %s507_s0 }
 0x34f   :  { %v275_v0 = vpop.permute.xlu2 %274 }
 0x366   :  { %v271_v61 = vpop.permute.xlu0 %270 }
 0x367   :  { %v273_v1 = vpop.permute.xlu1 %272 }
 0x368   :  { %v279_v2 = vsel %vm87_vm2, %v273_v1, %v275_v0  ;;  %v280_v3 = vsel %vm87_vm2, %v271_v61, %v273_v1 }
 0x369   :  { %v290_v4 = vsel %vm657_vm7, %v280_v3, %v258_v52  ;;  %v291_v5 = vsel %vm661_vm8, %v279_v2, %v259_v53 }
 0x36a   :  { %302 = vrot.lane.b32.xlu1 %v290_v4, %s511_s15  ;;  %304 = vrot.lane.b32.xlu2 %v291_v5, %s511_s15 }
 0x36e   :  { %v277_v10 = vpop.permute.xlu0 %276 }
 0x36f   :  { %v278_v11 = vsel %vm87_vm2, %v275_v0, %v277_v10  ;;  %v281_v12 = vsel %vm87_vm2, %v277_v10, %v271_v61 }
 0x370   :  { %v293_v13 = vsel %vm269_vm9, %v281_v12, %v261_v58  ;;  %v292_v14 = vsel %vm677_vm10, %v278_v11, %v260_v54  ;;  %vm721_vm9 = vcmp.ne.s32.totalorder %v327_v32, 0 }
 0x371   :  { %306 = vrot.lane.b32.xlu0 %v292_v14, %s511_s15 }
 0x372   :  { %308 = vrot.lane.b32.xlu1 %v293_v13, %s511_s15 }
 0x3c4   :  { %v305_v17 = vpop.permute.xlu2 %304 }
 0x3dc   :  { %v303_v18 = vpop.permute.xlu1 %302 }
 0x3dd   :  { %v313_v19 = vsel %vm310_vm11, %v303_v18, %v305_v17 }
 0x3de   :  { %v323_v20 = vsel %vm691_vm12, %v313_v19, %v290_v4 }
 0x3df   :  { %335 = vrot.lane.b32.xlu2 %v323_v20, %s512_s16 }
 0x3e3   :  { %v307_v25 = vpop.permute.xlu0 %306 }
 0x3e4   :  { %v309_v26 = vpop.permute.xlu1 %308  ;;  %v312_v27 = vsel %vm310_vm11, %v305_v17, %v307_v25 }
 0x3e5   :  { %v314_v45 = vsel %vm310_vm11, %v309_v26, %v303_v18  ;;  %v311_v28 = vsel %vm310_vm11, %v307_v25, %v309_v26  ;;  %v324_v50 = vsel %vm703_vm13, %v312_v27, %v291_v5 }
 0x3e6   :  { %v326_v29 = vsel %vm301_vm14, %v314_v45, %v293_v13  ;;  %337 = vrot.lane.b32.xlu0 %v324_v50, %s512_s16  ;;  %v325_v30 = vsel %vm300_vm15, %v311_v28, %v292_v14  ;;  %vm333_vm14 = vcmp.ne.s32.totalorder %v329_v33, 0 }
 0x3e7   :  { %341 = vrot.lane.b32.xlu2 %v326_v29, %s512_s16  ;;  %339 = vrot.lane.b32.xlu1 %v325_v30, %s512_s16 }
 0x439   :  { %v336_v31 = vpop.permute.xlu2 %335 }
 0x441   :  { %v342_v36 = vpop.permute.xlu2 %341 }
 0x458   :  { %v338_v35 = vpop.permute.xlu0 %337 }
 0x459   :  { %v346_v37 = vsel %vm343_vm0, %v336_v31, %v338_v35  ;;  %v340_v38 = vpop.permute.xlu1 %339 }
 0x45a   :  { %v344_v39 = vsel %vm343_vm0, %v340_v38, %v342_v36  ;;  %v356_v41 = vsel %vm721_vm9, %v346_v37, %v323_v20 }
 0x45b   :  { %380 = vrot.lane.b32.xlu0 %v356_v41, %s510_s14  ;;  %v358_v46 = vsel %vm333_vm14, %v344_v39, %v325_v30 }
 0x45c   :  { %384 = vrot.lane.b32.xlu2 %v358_v46, %s510_s14  ;;  %382 = vrot.lane.b32.xlu1 %v358_v46, %s510_s14 }
 0x463   :  { %386 = vrot.lane.b32.xlu0 %v356_v41, %s510_s14 }
 0x4b6   :  { %v385_v47 = vpop.permute.xlu2 %384 }
 0x4cd   :  { %v381_v44 = vpop.permute.xlu0 %380 }
 0x4ce   :  { %v383_v48 = vpop.permute.xlu1 %382 }
 0x4cf   :  { %v389_v49 = vsel %vm245_vm3, %v383_v48, %v385_v47  ;;  %v390_v51 = vsel %vm245_vm3, %v381_v44, %v383_v48 }
 0x4d0   :  { %v392_v52 = vsel %vm617_vm1, %v390_v51, %v356_v41  ;;  %v393_v53 = vsel %vm622_vm4, %v389_v49, %v358_v46 }
 0x4d1   :  { %396 = vrot.lane.b32.xlu1 %v392_v52, %s507_s0  ;;  %398 = vrot.lane.b32.xlu2 %v393_v53, %s507_s0 }
 0x4d5   :  { %v387_v54 = vpop.permute.xlu0 %386 }
 0x4d6   :  { %v388_v55 = vsel %vm245_vm3, %v385_v47, %v387_v54  ;;  %v391_v56 = vsel %vm245_vm3, %v387_v54, %v381_v44 }
 0x4d7   :  { %v394_v58 = vsel %vm626_vm5, %v388_v55, %v358_v46  ;;  %v395_v40 = vsel %vm648_vm6, %v391_v56, %v356_v41 }
 0x4d8   :  { %400 = vrot.lane.b32.xlu0 %v394_v58, %s507_s0 }
 0x4d9   :  { %402 = vrot.lane.b32.xlu1 %v395_v40, %s507_s0 }
 0x52b   :  { %v399_v42 = vpop.permute.xlu2 %398 }
 0x543   :  { %v397_v59 = vpop.permute.xlu1 %396 }
 0x544   :  { %v406_v60 = vsel %vm87_vm2, %v397_v59, %v399_v42 }
 0x545   :  { %v407_v61 = vsel %vm657_vm7, %v406_v60, %v392_v52 }
 0x546   :  { %410 = vrot.lane.b32.xlu2 %v407_v61, %s511_s15 }
 0x54a   :  { %v401_v0 = vpop.permute.xlu0 %400 }
 0x54b   :  { %v405_v43 = vsel %vm87_vm2, %v399_v42, %v401_v0  ;;  %v403_v57 = vpop.permute.xlu1 %402 }
 0x54c   :  { %v404_v1 = vsel %vm87_vm2, %v401_v0, %v403_v57  ;;  %v408_v2 = vsel %vm661_vm8, %v405_v43, %v393_v53 }
 0x54d   :  { %v409_v3 = vsel %vm677_vm10, %v404_v1, %v394_v58  ;;  %412 = vrot.lane.b32.xlu0 %v408_v2, %s511_s15 }
 0x54e   :  { %414 = vrot.lane.b32.xlu1 %v409_v3, %s511_s15 }
 0x5a0   :  { %v411_v62 = vpop.permute.xlu2 %410 }
 0x5bf   :  { %v413_v4 = vpop.permute.xlu0 %412 }
 0x5c0   :  { %v415_v5 = vpop.permute.xlu1 %414  ;;  %v417_v6 = vsel %vm310_vm11, %v411_v62, %v413_v4 }
 0x5c1   :  { %v416_v7 = vsel %vm310_vm11, %v413_v4, %v415_v5  ;;  %v418_v63 = vsel %vm691_vm12, %v417_v6, %v407_v61 }
 0x5c2   :  { %420 = vrot.lane.b32.xlu2 %v418_v63, %s512_s16  ;;  %v419_v8 = vsel %vm703_vm13, %v416_v7, %v408_v2 }
 0x5c3   :  { %422 = vrot.lane.b32.xlu0 %v419_v8, %s512_s16 }
 0x61c   :  { %v421_v10 = vpop.permute.xlu2 %420 }
 0x635   :  { %v423_v11 = vpop.permute.xlu0 %422 }
 0x636   :  { %v424_v12 = vsel %vm343_vm0, %v421_v10, %v423_v11 }
 0x637   :  { %v425_v13 = vsel %vm721_vm9, %v424_v12, %v418_v63 }
 0x638   :  { %426 = vst [vmem:[#allocation5] sm:$0xf] %v425_v13 }
 0x639   :  { %437 = dma.vmem_to_hbm [thread:$0]  %s433_s18, 64, %s435_s21, [#allocation4]  }
 0x63a   :  { %503 = dma.done.wait [#allocation4], 64  }
 0x63b   :  { %504 = vsyncadd [#allocation4], 4294967232 }
 0x63c   :  { %442 = vsyncpa [#allocation3], 1 }
 0x63d   :  { %443 = vsyncpa [#allocation4], 1 }

</bundles_post_ra>
